<compile_context>
chip_gen: v7x
topology: tpu7x:2x2x1
jax: 0.10.0
libtpu: 0.0.40
codegen_flags: <defaults>
</compile_context>

<pallas_src>
import jax
import jax.numpy as jnp
from jax.experimental import pallas as pl
from jax.experimental.pallas import tpu as pltpu


def _round_up(x: int, m: int) -> int:
    return (x + m - 1) // m * m


def _lm_head_kernel(h_ref, w_ref, o_ref):
    """One (tm, tn) logits tile: full (padded) D contracted in a single MXU matmul.

    h_ref: (tm, D_pad)  hidden tile (compute dtype, e.g. bf16)
    w_ref: (D_pad, tn)  pre-transposed tied-weight tile (MXU-native K,N layout)
    o_ref: (tm, tn)     logits tile (written once; f32 accumulation inside the MXU)
    """
    o_ref[...] = jnp.dot(
        h_ref[...], w_ref[...], preferred_element_type=jnp.float32
    ).astype(o_ref.dtype)


def prepare_lm_head_weight(tied_weight, compute_dtype=jnp.bfloat16):
    """One-time weight preparation, hoisted out of the per-call hot path.

    Casts the tied (V, D) embedding / lm_head weight to the compute dtype, zero-pads
    V and D up to lane-dense multiples of 128, and transposes to (D_pad, V_pad) so the
    kernel's RHS blocks are consumed by the MXU without any per-tile transpose.
    """
    V, D = tied_weight.shape
    D_pad = _round_up(D, 128)
    V_pad = _round_up(V, 128)
    w = tied_weight.astype(compute_dtype)
    if (V_pad, D_pad) != (V, D):
        w = jnp.pad(w, ((0, V_pad - V), (0, D_pad - D)))
    return jnp.transpose(w)  # (D_pad, V_pad)


def _default_tm() -> int:
    # Generation-specific M tile (weight-stream arithmetic intensity ~= tm FLOP/byte):
    #   v6e ridge ~680 FLOP/B -> tm ~1024; v7x ridge ~310 and v5e ~240 -> tm ~512.
    try:
        kind = jax.devices()[0].device_kind.lower()
    except Exception:
        return 512
    if "v6" in kind:
        return 1024
    return 512


def mamba_lm_head_forward(
    hidden_states,
    tied_weight,
    num_last_tokens: int = 0,
    *,
    prepared_weight=None,
    tm=None,
    tn: int = 512,
    compute_dtype=jnp.bfloat16,
    out_dtype=None,
):
    """Replicates MambaLMHead.forward given backbone output `hidden_states`.

    hidden_states: (B, L, D)   backbone output
    tied_weight:   (V, D)      lm_head.weight == backbone.embedding.weight
    prepared_weight: optional output of prepare_lm_head_weight() (amortize the
                     cast/pad/transpose across calls — the weight is a constant).
    Returns (logits, hidden_states) matching CausalLMOutput fields.
    """
    if num_last_tokens > 0:
        hidden_states = hidden_states[:, -num_last_tokens:]

    B, L, D = hidden_states.shape
    V = tied_weight.shape[0]
    M = B * L
    if out_dtype is None:
        # bf16 logits halve the kernel's output HBM writes; callers needing f32
        # parity pass out_dtype=jnp.float32 explicitly.
        out_dtype = compute_dtype
    out_dtype = jnp.dtype(out_dtype)

    D_pad = _round_up(D, 128)
    V_pad = _round_up(V, 128)  # lane-dense vocab, padded only to 128 (not to tn)
    M_pad = _round_up(M, 8)

    if prepared_weight is None:
        # TODO(synk): callers should call prepare_lm_head_weight once; doing it per
        # call re-streams the full (V, D) weight through HBM before the kernel runs.
        prepared_weight = prepare_lm_head_weight(tied_weight, compute_dtype)
    assert prepared_weight.shape == (D_pad, V_pad), prepared_weight.shape

    # ---- tile selection ------------------------------------------------------
    if M_pad <= 256:
        # Decode / small num_last_tokens: pure weight-bandwidth regime. Single i
        # block, wide weight slabs -> few grid steps, both TCs stream the weight.
        tm_eff = M_pad
        tn_eff = min(2048, V_pad)
    else:
        tm_eff = min(tm if tm is not None else _default_tm(), M_pad)
        tn_eff = min(tn, V_pad)

    h2 = hidden_states.reshape(M, D).astype(compute_dtype)
    if (M_pad, D_pad) != (M, D):
        h2 = jnp.pad(h2, ((0, M_pad - M), (0, D_pad - D)))

    grid = (pl.cdiv(M_pad, tm_eff), pl.cdiv(V_pad, tn_eff))

    itm = jnp.dtype(compute_dtype).itemsize
    # Double-buffered working set + headroom for compiler scratch. Explicit so the
    # large prefill tiles also compile under v5e's 16 MiB default scoped VMEM limit,
    # while staying well inside v7x's 64 MiB physical VMEM.
    tile_bytes = 2 * (
        tm_eff * D_pad * itm
        + D_pad * tn_eff * itm
        + tm_eff * tn_eff * out_dtype.itemsize
    )
    vmem_limit = int(min(128 * 1024 * 1024, tile_bytes + (16 << 20)))

    cost = pl.CostEstimate(
        flops=2 * M_pad * D_pad * V_pad,
        transcendentals=0,
        bytes_accessed=(
            M_pad * D_pad * itm                   # hidden: read once
            + grid[0] * V_pad * D_pad * itm       # weight: re-streamed once per i block
            + M_pad * V_pad * out_dtype.itemsize  # logits: written once
        ),
    )

    logits_flat = pl.pallas_call(
        _lm_head_kernel,
        out_shape=jax.ShapeDtypeStruct((M_pad, V_pad), out_dtype),
        grid=grid,
        in_specs=[
            pl.BlockSpec((tm_eff, D_pad), lambda i, j: (i, 0)),
            pl.BlockSpec((D_pad, tn_eff), lambda i, j: (0, j)),
        ],
        out_specs=pl.BlockSpec((tm_eff, tn_eff), lambda i, j: (i, j)),
        compiler_params=pltpu.CompilerParams(
            dimension_semantics=("parallel", "parallel"),
            vmem_limit_bytes=vmem_limit,
        ),
        cost_estimate=cost,
    )(h2, prepared_weight)

    if (M_pad, V_pad) != (M, V):
        # TODO(synk): consumers (e.g. a fused sampler) could take the padded slab and
        # fuse this crop to avoid an extra HBM read+write pass over the logits.
        logits_flat = logits_flat[:M, :V]
    logits = logits_flat.reshape(B, L, V)
    return logits, hidden_states


if __name__ == "__main__":
    # Small, deterministic config consistent with MambaConfig defaults (scaled down).
    vocab_size = 37
    d_model = 32
    batch = 2
    seqlen = 8
    num_last_tokens = 4

    key = jax.random.PRNGKey(0)
    k_emb, k_hid = jax.random.split(key)

    # Tied embedding / lm_head weight: nn.Embedding init -> normal(std=0.02).
    tied_weight = 0.02 * jax.random.normal(
        k_emb, (vocab_size, d_model), dtype=jnp.float32
    )
    # Stand-in backbone output hidden states (B, L, D).
    hidden_states = jax.random.normal(
        k_hid, (batch, seqlen, d_model), dtype=jnp.float32
    )

    # One-time weight preparation (outside the per-call hot path).
    prepared = prepare_lm_head_weight(tied_weight)

    logits, hs = mamba_lm_head_forward(
        hidden_states,
        tied_weight,
        num_last_tokens=num_last_tokens,
        prepared_weight=prepared,
    )
    logits = jax.block_until_ready(logits)

    # Reference check (same bf16 operand rounding; kernel output is bf16 by default).
    h_sl = hidden_states[:, -num_last_tokens:]
    ref = jnp.einsum(
        "bld,vd->blv",
        h_sl.astype(jnp.bfloat16).astype(jnp.float32),
        tied_weight.astype(jnp.bfloat16).astype(jnp.float32),
        precision=jax.lax.Precision.HIGHEST,
    )
    assert logits.shape == (batch, num_last_tokens, vocab_size)
    assert hs.shape == (batch, num_last_tokens, d_model)
    assert jnp.allclose(logits.astype(jnp.float32), ref, atol=2e-2, rtol=2e-2)

    print("KERNEL_OK")
</pallas_src>

<mosaic_0001>
module attributes {stable_mosaic.version = 11 : i64} {
  func.func @_lm_head_kernel(%arg0: i32, %arg1: i32, %arg2: memref<8x128xbf16, #tpu.memory_space<vmem>>, %arg3: memref<128x128xbf16, #tpu.memory_space<vmem>>, %arg4: memref<8x128xbf16, #tpu.memory_space<vmem>>) attributes {dimension_semantics = [#tpu.dimension_semantics<parallel>, #tpu.dimension_semantics<parallel>], iteration_bounds = array<i64: 1, 1>, scalar_prefetch = 0 : i64, scratch_operands = 0 : i64, tpu.core_type = #tpu.core_type<tc>, window_params = [{transform_indices = @transform_0, window_bounds = array<i64: 8, 128>}, {transform_indices = @transform_1, window_bounds = array<i64: 128, 128>}, {transform_indices = @transform_2, window_bounds = array<i64: 8, 128>}]} {
    %c0 = arith.constant 0 : index
    %c0_0 = arith.constant 0 : index
    %0 = vector.load %arg2[%c0, %c0_0] : memref<8x128xbf16, #tpu.memory_space<vmem>>, vector<8x128xbf16>
    %c0_1 = arith.constant 0 : index
    %c0_2 = arith.constant 0 : index
    %1 = vector.load %arg3[%c0_1, %c0_2] : memref<128x128xbf16, #tpu.memory_space<vmem>>, vector<128x128xbf16>
    %cst = arith.constant dense<0.000000e+00> : vector<8x128xf32>
    %2 = tpu.matmul %0, %1, %cst {dimension_numbers = #tpu.dot_dimension_numbers<[1], [0], [0], [1], [0, 0, 1, 1], [], []>} : vector<8x128xbf16>, vector<128x128xbf16>, vector<8x128xf32> -> vector<8x128xf32>
    %3 = arith.truncf %2 : vector<8x128xf32> to vector<8x128xbf16>
    %c0_3 = arith.constant 0 : index
    %c0_4 = arith.constant 0 : index
    %4 = vector.load %arg4[%c0_3, %c0_4] : memref<8x128xbf16, #tpu.memory_space<vmem>>, vector<8x128xbf16>
    tpu.vector_store %arg4[%c0_3, %c0_4], %3 {strides = array<i32>} : memref<8x128xbf16, #tpu.memory_space<vmem>>, vector<8x128xbf16>,
    return
  }
  func.func @transform_0(%arg0: i32, %arg1: i32) -> (i32, i32) {
    %c0_i32 = arith.constant 0 : i32
    %c0_i32_0 = arith.constant 0 : i32
    return %arg0, %c0_i32 : i32, i32
  }
  func.func @transform_1(%arg0: i32, %arg1: i32) -> (i32, i32) {
    %c0_i32 = arith.constant 0 : i32
    %c0_i32_0 = arith.constant 0 : i32
    return %c0_i32, %arg1 : i32, i32
  }
  func.func @transform_2(%arg0: i32, %arg1: i32) -> (i32, i32) {
    %c0_i32 = arith.constant 0 : i32
    return %arg0, %arg1 : i32, i32
  }
}

</mosaic_0001>

<bundles_post_ra>
// kernel: tpu_custom_call.1
= control target key start
LH: loop header
LB: loop body
LE: loop exit
PB: predicated region body
PF: predicated region fallthrough
CT: control target
= control target key end

     0   :  { %7 = vsyncpa [#allocation3], 0  ;;  %s351_s0 = inlined_call_operand.hbm [shape: bf16[8,128], index: 0, kind: input, shape index: {}]   ;;  %s352_s1 = inlined_call_operand.hbm [shape: bf16[128,128], index: 1, kind: input, shape index: {}]   ;;  %s353_s2 = inlined_call_operand.hbm [shape: bf16[8,128], index: 2, kind: output, shape index: {}]  }
   0x1   :  { %8 = vsyncpa [#allocation6], 0 }
   0x2   :  { %9 = vsyncpa [#allocation4], 0  ;;  %s286_s9 = smov [#allocation2]   ;;  %s287_s11 = smov [#allocation5]  }
   0x3   :  { %s16_s10 = sshll.u32 %s286_s9, 4  ;;  %s25_s12 = sshll.u32 %s287_s11, 4  ;;  %s17_s10 = int_to_ptr.vmem [resolvable:$true] %s16_s10  ;;  %s308_s12 = int_to_ptr.vmem [resolvable:$true] %s25_s12 }
   0x4   :  { %s214_s15 = scalar_lea.hbm %s351_s0, 64 }
   0x5   :  { %p215_p0 = scmp.ne.s32.totalorder %s351_s0, %s214_s15  ;;  %p218_p1 = scmp.lt.u32.totalorder %s214_s15, %s351_s0 }
   0x7   :  { %p220_p2 = pnand %p218_p1, %p215_p0 }
   0x9   :  { %223 = shalt.err (!%p220_p2)
}
   0xa   :  { %s224_s20 = scalar_lea.vmem %s17_s10, 64  ;;  %p229_p4 = scmp.lt.s32.totalorder %s17_s10, %s17_s10 }
   0xb   :  { %p225_p3 = scmp.ne.s32.totalorder %s17_s10, %s224_s20  ;;  %p230_p5 = scmp.lt.s32.totalorder %s224_s20, %s224_s20 }
   0xd   :  { %p231_p6 = por %p230_p5, %p229_p4 }
   0xf   :  { %p232_p7 = pnand %p231_p6, %p225_p3 }
  0x11   :  { %235 = shalt.err (!%p232_p7)
}
  0x12   :  { %19 = dma.hbm_to_vmem [thread:$0]  %s351_s0, 64, %s17_s10, [#allocation3]  }
  0x13   :  { %s236_s25 = scalar_lea.hbm %s352_s1, 1024 }
  0x14   :  { %p237_p8 = scmp.ne.s32.totalorder %s352_s1, %s236_s25  ;;  %p240_p9 = scmp.lt.u32.totalorder %s236_s25, %s352_s1 }
  0x16   :  { %p242_p10 = pnand %p240_p9, %p237_p8 }
  0x18   :  { %245 = shalt.err (!%p242_p10)
}
  0x19   :  { %s246_s30 = scalar_lea.vmem %s308_s12, 1024  ;;  %p251_p12 = scmp.lt.s32.totalorder %s308_s12, %s308_s12 }
  0x1a   :  { %p247_p11 = scmp.ne.s32.totalorder %s308_s12, %s246_s30  ;;  %p252_p13 = scmp.lt.s32.totalorder %s246_s30, %s246_s30 }
  0x1c   :  { %p253_p0 = por %p252_p13, %p251_p12 }
  0x1e   :  { %p254_p1 = pnand %p253_p0, %p247_p11 }
  0x20   :  { %257 = shalt.err (!%p254_p1)
}
  0x21   :  { %s288_s0 = smov 64   ;;  %s289_s3 = smov 4  }
  0x22   :  { %31 = dma.hbm_to_vmem [thread:$0]  %s352_s1, 1024, %s308_s12, [#allocation6], %s288_s0, %s288_s0, %s289_s3  }
  0x23   :  { %280 = dma.done.wait [#allocation3], 64  }
  0x24   :  { %281 = vsyncadd [#allocation3], 4294967232 }
  0x25   :  { %282 = dma.done.wait [#allocation6], 1024  }
  0x26   :  { %283 = vsyncadd [#allocation6], 4294966272  ;;  %v290_v0 = vmov 0.0   ;;  %vm291_vm0 = vmmov 0   ;;  %v206_v1 = vld [vmem:[#allocation5] sm:$0xff]   ;;  %v207_v2 = vld [vmem:[#allocation5 + $0x8] sm:$0xff]  }
  0x27   :  { %179 = vmatprep.subr.bf16.mxu0 %v290_v0  ;;  %195 = vmatprep.mubr.msk.bf16.mxu0 %vm291_vm0, %v290_v0  ;;  %v208_v3 = vld [vmem:[#allocation5 + $0x10] sm:$0xff]   ;;  %v209_v4 = vld [vmem:[#allocation5 + $0x18] sm:$0xff]   ;;  %v210_v5 = vld [vmem:[#allocation5 + $0x20] sm:$0xff]   ;;  %s292_s1 = smov [#allocation7]  }
  0x28   :  { %180 = vmatpush3.bf16.msra.mxu0 %v206_v1  ;;  %v211_v6 = vld [vmem:[#allocation5 + $0x28] sm:$0xff]   ;;  %v212_v7 = vld [vmem:[#allocation5 + $0x30] sm:$0xff]   ;;  %v213_v8 = vld [vmem:[#allocation5 + $0x38] sm:$0xff]   ;;  %s152_s6 = sshll.u32 %s292_s1, 4  ;;  %s153_s6 = int_to_ptr.vmem [resolvable:$true] %s152_s6 }
  0x29   :  { %181 = vmatprep.subr.bf16.mxu0 %v290_v0  ;;  %v39_v9 = vld [vmem:[#allocation2] sm:$0xf]  ;;  %s258_s7 = scalar_lea.vmem %s153_s6, 64  ;;  %p263_p3 = scmp.lt.s32.totalorder %s153_s6, %s153_s6 }
  0x2a   :  { %p259_p2 = scmp.ne.s32.totalorder %s153_s6, %s258_s7  ;;  %p264_p4 = scmp.lt.s32.totalorder %s258_s7, %s258_s7 }
  0x2c   :  { %182 = vmatpush3.bf16.msra.mxu0 %v207_v2  ;;  %p265_p5 = por %p264_p4, %p263_p3 }
  0x2d   :  { %183 = vmatprep.subr.bf16.mxu0 %v290_v0 }
  0x2e   :  { %p266_p6 = pnand %p265_p5, %p259_p2 }
  0x30   :  { %184 = vmatpush3.bf16.msra.mxu0 %v208_v3 }
  0x31   :  { %185 = vmatprep.subr.bf16.mxu0 %v290_v0 }
  0x34   :  { %186 = vmatpush3.bf16.msra.mxu0 %v209_v4 }
  0x35   :  { %187 = vmatprep.subr.bf16.mxu0 %v290_v0 }
  0x38   :  { %188 = vmatpush3.bf16.msra.mxu0 %v210_v5 }
  0x39   :  { %189 = vmatprep.subr.bf16.mxu0 %v290_v0 }
  0x3c   :  { %190 = vmatpush3.bf16.msra.mxu0 %v211_v6 }
  0x3d   :  { %191 = vmatprep.subr.bf16.mxu0 %v290_v0 }
  0x40   :  { %192 = vmatpush3.bf16.msra.mxu0 %v212_v7 }
  0x41   :  { %193 = vmatprep.subr.bf16.mxu0 %v290_v0 }
  0x44   :  { %194 = vmatpush3.bf16.msra.mxu0 %v213_v8 }
  0x47   :  { %196 = vmatmul.mubr.bf16.vlgmr.msra.gmra.mrb[0].mxu0 %v39_v9 }
 0x11a   :  { %v138_v10 = vpop.f32.mrb[0].mxu0 }
 0x11b   :  { %v144_v11 = vpack.c.bf16 %v138_v10, %v138_v10  ;;  %v197_v12 = vpop.f32.mrb[1].mxu0 }
 0x11c   :  { %v141_v13 = vpop.f32.mrb[2].mxu0 }
 0x11d   :  { %145 = vst [vmem:[#allocation7] sm:$0xf] %v144_v11  ;;  %v198_v14 = vpop.f32.mrb[3].mxu0 }
 0x11e   :  { %269 = shalt.err (!%p266_p6)
}
 0x11f   :  { %s270_s10 = scalar_lea.hbm %s353_s2, 64 }
 0x120   :  { %p271_p7 = scmp.ne.s32.totalorder %s353_s2, %s270_s10  ;;  %p274_p8 = scmp.lt.u32.totalorder %s270_s10, %s353_s2 }
 0x122   :  { %p276_p9 = pnand %p274_p8, %p271_p7 }
 0x124   :  { %279 = shalt.err (!%p276_p9)
}
 0x125   :  { %155 = dma.vmem_to_hbm [thread:$0]  %s153_s6, 64, %s353_s2, [#allocation4]  }
 0x126   :  { %284 = dma.done.wait [#allocation4], 64  }
 0x127   :  { %285 = vsyncadd [#allocation4], 4294967232 }
 0x128   :  { %159 = vsyncpa [#allocation3], 1 }
 0x129   :  { %160 = vsyncpa [#allocation6], 1 }
 0x12a   :  { %161 = vsyncpa [#allocation4], 1 }

</bundles_post_ra>
